<compile_context>
chip_gen: v7x
topology: tpu7x:2x2x1
jax: 0.10.0
libtpu: 0.0.40
codegen_flags: <defaults>
</compile_context>

<pallas_src>
import jax
import jax.numpy as jnp
from jax import lax
from jax.experimental import pallas as pl
from jax.experimental.pallas import tpu as pltpu


# ----------------------------------------------------------------------------
# Kernel
# ----------------------------------------------------------------------------
def make_kernel(layout):
    offsets = layout["offsets"]   # static Python ints (trace-time)
    dims = layout["dims"]

    def kernel(chunks_ref, slab_ref, out_ref):
        num_chunks = chunks_ref.shape[0]

        def blk(name):
            r = offsets[name]
            fin, fout = dims[name]
            return slab_ref[r:r + fin, 0:fout]        # static slice of VMEM ref

        def lin(x, name):
            return (jnp.dot(x, blk(name + "_w"), preferred_element_type=jnp.float32)
                    + blk(name + "_b"))

        # ---- batched stage: everything that does not depend on `tmp`,
        # ---- computed for all chunks at once as (N, dim) row-major matmuls.
        x = chunks_ref[...]                                        # (N, 3*length)
        # fused 3-tap Conv1d (bias=False): one matmul vs. pre-flattened weight
        h = jnp.tanh(jnp.dot(x, blk("conv_w"),
                             preferred_element_type=jnp.float32))  # (N, length)
        # TODO(synk): dropout layers omitted (inference semantics -> identity).
        h = jnp.tanh(lin(h, "enc1"))
        h = jnp.tanh(lin(h, "enc2"))
        h = jnp.tanh(lin(h, "enc3"))
        h = jnp.tanh(lin(h, "dec1"))
        h = jnp.tanh(lin(h, "dec2"))
        t = jnp.tanh(lin(h, "t1"))
        t = jnp.tanh(lin(t, "t2"))
        t3 = jnp.tanh(lin(t, "t3"))                                # (N, width//2)

        # transformer4 folded into transformer5 (no nonlinearity between them):
        #   pre5[i] = point_cnd2[i] @ W5a + (b4 @ W5b + b5)
        pre5 = (jnp.dot(t3, blk("t5a_w"), preferred_element_type=jnp.float32)
                + blk("t45_b"))                                    # (N, width)

        # ---- serial recurrence: one matmul per chunk, `tmp` stays in vregs.
        w45 = blk("t45_w")                                         # (width, width)
        tmp = jnp.tanh(pre5[0:1, :])                               # tmp_0 = 0 -> skip dot
        for i in range(1, num_chunks):                             # static unroll (N small)
            tmp = jnp.tanh(pre5[i:i + 1, :]
                           + jnp.dot(tmp, w45, preferred_element_type=jnp.float32))

        out_ref[...] = tmp                                         # single write

    return kernel


# ----------------------------------------------------------------------------
# One-time parameter preparation (hoisted out of the per-call path)
# ----------------------------------------------------------------------------
def prepare_params(params, width, length):
    assert length in (3, 4), "Conv1d(k=3, stride=2) + flatten requires length in {3, 4}"
    half = width // 2
    f32 = jnp.float32

    blocks = {}

    # Fused Conv1d weight: [i*3+k, o] = conv_w[o, i, k]
    blocks["conv_w"] = jnp.transpose(jnp.asarray(params["conv_w"], f32),
                                     (1, 2, 0)).reshape(3 * length, length)

    for name in ["enc1", "enc2", "enc3", "dec1", "dec2", "t1", "t2", "t3"]:
        w, b = params[name]
        blocks[name + "_w"] = jnp.asarray(w, f32).T          # (in, out)
        blocks[name + "_b"] = jnp.asarray(b, f32).reshape(1, -1)

    # Fold transformer4 into transformer5 (exact: no nonlinearity between them).
    w4, b4 = params["t4"]                                    # (half, width), (half,)
    w5, b5 = params["t5"]                                    # (width, width), (width,)
    w5 = jnp.asarray(w5, f32)
    w5a = w5[:, :half].T                                     # point_cnd2 half, (half, width)
    w5b = w5[:, half:].T                                     # tmp1 half,       (half, width)
    w45 = jnp.dot(jnp.asarray(w4, f32).T, w5b,
                  precision=lax.Precision.HIGHEST)           # (width, width)
    b45 = (jnp.dot(jnp.asarray(b4, f32).reshape(1, -1), w5b,
                   precision=lax.Precision.HIGHEST)
           + jnp.asarray(b5, f32).reshape(1, -1))            # (1, width)
    blocks["t5a_w"] = w5a
    blocks["t45_w"] = w45
    blocks["t45_b"] = b45

    # Pack everything into one (rows, 128) slab; each block 8-row aligned so
    # static slices inside the kernel map cleanly onto (8, 128) tiles.
    offsets, dims = {}, {}
    row = 0
    order = list(blocks.keys())
    for name in order:
        blk = blocks[name]
        assert blk.shape[1] <= 128
        offsets[name] = row
        dims[name] = tuple(blk.shape)
        row += -(-blk.shape[0] // 8) * 8                     # round up to multiple of 8
    slab = jnp.zeros((row, 128), f32)
    for name in order:
        blk = blocks[name]
        r = offsets[name]
        slab = slab.at[r:r + blk.shape[0], 0:blk.shape[1]].set(blk)

    return slab, {"offsets": offsets, "dims": dims}


# ----------------------------------------------------------------------------
# Forward wrapper (single jit: chunk prep fused with the pallas_call)
# ----------------------------------------------------------------------------
def build_forward(layout, width, length):
    kernel = make_kernel(layout)
    vmem = pltpu.MemorySpace.VMEM

    @jax.jit
    def forward(pc, slab):
        C, total = pc.shape
        assert C == length and total % length == 0
        num_chunks = total // length
        # torch.split(pc, length, 1)[c] == pc[:, c*length:(c+1)*length];
        # Conv1d(k=3, stride=2) on L_in<=4 only uses columns 0..2 of each chunk.
        chunks = pc.reshape(length, num_chunks, length).transpose(1, 0, 2)
        chunks3 = chunks[:, :, 0:3].reshape(num_chunks, 3 * length)     # (N, 3L)

        out = pl.pallas_call(
            kernel,
            out_shape=jax.ShapeDtypeStruct((1, width), jnp.float32),
            in_specs=[pl.BlockSpec(memory_space=vmem),     # chunks3, fully resident
                      pl.BlockSpec(memory_space=vmem)],    # packed weight slab (1 DMA)
            out_specs=pl.BlockSpec(memory_space=vmem),
        )(chunks3, slab)
        return out[0]

    return forward


# ----------------------------------------------------------------------------
# Parameter init + pure-JAX reference (mirrors the PyTorch forward, eval mode)
# ----------------------------------------------------------------------------
def init_params(key, width, length):
    def lin(k, fan_in, fan_out):
        kw, kb = jax.random.split(k)
        w = jax.random.normal(kw, (fan_out, fan_in), jnp.float32) * 0.1
        b = jax.random.normal(kb, (fan_out,), jnp.float32) * 0.1
        return w, b

    keys = jax.random.split(key, 11)
    p = {}
    p["conv_w"] = jax.random.normal(keys[0], (length, length, 3), jnp.float32) * 0.1
    p["enc1"] = lin(keys[1], length, length // 2)
    p["enc2"] = lin(keys[2], length // 2, length // 3)
    p["enc3"] = lin(keys[3], length // 3, length // 3)
    p["dec1"] = lin(keys[4], length // 3, length // 2)
    p["dec2"] = lin(keys[5], length // 2, length)
    p["t1"] = lin(keys[6], length, width * 2)
    p["t2"] = lin(keys[7], width * 2, width)
    p["t3"] = lin(keys[8], width, width // 2)
    p["t4"] = lin(keys[9], width, width // 2)
    p["t5"] = lin(keys[10], width, width)
    return p


def encoder_cnn_ref(pc, params, width, length):
    def lin(name, x):
        w, b = params[name]
        return x @ w.T + b

    num_chunks = pc.shape[1] // length
    tmp = jnp.zeros((width,), jnp.float32)
    for i in range(num_chunks):
        points = pc[:, i * length:(i + 1) * length]
        tmp1 = lin("t4", tmp)
        conv = jnp.einsum("oik,ik->o", params["conv_w"], points[:, 0:3])
        h = jnp.tanh(conv)
        h = jnp.tanh(lin("enc1", h))
        h = jnp.tanh(lin("enc2", h))
        h = jnp.tanh(lin("enc3", h))
        h = jnp.tanh(lin("dec1", h))
        h = jnp.tanh(lin("dec2", h))
        t = jnp.tanh(lin("t1", h))
        t = jnp.tanh(lin("t2", t))
        t = jnp.tanh(lin("t3", t))
        cat = jnp.concatenate([t, tmp1])
        tmp = jnp.tanh(lin("t5", cat))
    return tmp


if __name__ == "__main__":
    width, length = 32, 4      # length must be 3 or 4 for the PyTorch forward
    num_chunks = 3             # pc split into 3 chunks along dim 1
    key = jax.random.PRNGKey(0)
    kp, kx = jax.random.split(key)
    params = init_params(kp, width, length)
    pc = jax.random.normal(kx, (length, num_chunks * length), jnp.float32)

    # One-time prep (slab packing, transposes, t4->t5 fold) -- NOT per call.
    slab, layout = prepare_params(params, width, length)
    forward = build_forward(layout, width, length)

    out = forward(pc, slab)
    out = jax.block_until_ready(out)

    ref = encoder_cnn_ref(pc, params, width, length)
    assert out.shape == (width,)
    assert jnp.allclose(out, ref, atol=1e-4, rtol=1e-4), (out, ref)
    print("KERNEL_OK")
</pallas_src>

<mosaic_0001>
module attributes {stable_mosaic.version = 11 : i64} {
  func.func @kernel(%arg0: memref<3x12xf32, #tpu.memory_space<vmem>>, %arg1: memref<280x128xf32, #tpu.memory_space<vmem>>, %arg2: memref<1x32xf32, #tpu.memory_space<vmem>>) attributes {dimension_semantics = [], scalar_prefetch = 0 : i64, scratch_operands = 0 : i64, tpu.core_type = #tpu.core_type<tc>} {
    %c0 = arith.constant 0 : index
    %c0_0 = arith.constant 0 : index
    %0 = vector.load %arg0[%c0, %c0_0] : memref<3x12xf32, #tpu.memory_space<vmem>>, vector<3x12xf32>
    %c0_1 = arith.constant 0 : index
    %c0_2 = arith.constant 0 : index
    %1 = vector.load %arg1[%c0_1, %c0_2] : memref<280x128xf32, #tpu.memory_space<vmem>>, vector<12x4xf32>
    %cst = arith.constant dense<0.000000e+00> : vector<3x4xf32>
    %2 = tpu.matmul %0, %1, %cst {dimension_numbers = #tpu.dot_dimension_numbers<[1], [0], [0], [1], [0, 0, 1, 1], [], []>} : vector<3x12xf32>, vector<12x4xf32>, vector<3x4xf32> -> vector<3x4xf32>
    %3 = math.tanh %2 : vector<3x4xf32>
    %c16 = arith.constant 16 : index
    %c0_3 = arith.constant 0 : index
    %4 = vector.load %arg1[%c16, %c0_3] : memref<280x128xf32, #tpu.memory_space<vmem>>, vector<4x2xf32>
    %cst_4 = arith.constant dense<0.000000e+00> : vector<3x2xf32>
    %5 = tpu.matmul %3, %4, %cst_4 {dimension_numbers = #tpu.dot_dimension_numbers<[1], [0], [0], [1], [0, 0, 1, 1], [], []>} : vector<3x4xf32>, vector<4x2xf32>, vector<3x2xf32> -> vector<3x2xf32>
    %c24 = arith.constant 24 : index
    %c0_5 = arith.constant 0 : index
    %6 = vector.load %arg1[%c24, %c0_5] : memref<280x128xf32, #tpu.memory_space<vmem>>, vector<1x2xf32>
    %7 = vector.broadcast %6 : vector<1x2xf32> to vector<3x2xf32>
    %8 = arith.addf %5, %7 : vector<3x2xf32>
    %9 = math.tanh %8 : vector<3x2xf32>
    %c32 = arith.constant 32 : index
    %c0_6 = arith.constant 0 : index
    %10 = vector.load %arg1[%c32, %c0_6] : memref<280x128xf32, #tpu.memory_space<vmem>>, vector<2x1xf32>
    %cst_7 = arith.constant dense<0.000000e+00> : vector<3x1xf32>
    %11 = tpu.matmul %9, %10, %cst_7 {dimension_numbers = #tpu.dot_dimension_numbers<[1], [0], [0], [1], [0, 0, 1, 1], [], []>} : vector<3x2xf32>, vector<2x1xf32>, vector<3x1xf32> -> vector<3x1xf32>
    %c40 = arith.constant 40 : index
    %c0_8 = arith.constant 0 : index
    %12 = vector.load %arg1[%c40, %c0_8] : memref<280x128xf32, #tpu.memory_space<vmem>>, vector<1x1xf32>
    %13 = vector.broadcast %12 : vector<1x1xf32> to vector<3x1xf32>
    %14 = arith.addf %11, %13 : vector<3x1xf32>
    %15 = math.tanh %14 : vector<3x1xf32>
    %c48 = arith.constant 48 : index
    %c0_9 = arith.constant 0 : index
    %16 = vector.load %arg1[%c48, %c0_9] : memref<280x128xf32, #tpu.memory_space<vmem>>, vector<1x1xf32>
    %cst_10 = arith.constant dense<0.000000e+00> : vector<3x1xf32>
    %17 = tpu.matmul %15, %16, %cst_10 {dimension_numbers = #tpu.dot_dimension_numbers<[1], [0], [0], [1], [0, 0, 1, 1], [], []>} : vector<3x1xf32>, vector<1x1xf32>, vector<3x1xf32> -> vector<3x1xf32>
    %c56 = arith.constant 56 : index
    %c0_11 = arith.constant 0 : index
    %18 = vector.load %arg1[%c56, %c0_11] : memref<280x128xf32, #tpu.memory_space<vmem>>, vector<1x1xf32>
    %19 = vector.broadcast %18 : vector<1x1xf32> to vector<3x1xf32>
    %20 = arith.addf %17, %19 : vector<3x1xf32>
    %21 = math.tanh %20 : vector<3x1xf32>
    %c64 = arith.constant 64 : index
    %c0_12 = arith.constant 0 : index
    %22 = vector.load %arg1[%c64, %c0_12] : memref<280x128xf32, #tpu.memory_space<vmem>>, vector<1x2xf32>
    %cst_13 = arith.constant dense<0.000000e+00> : vector<3x2xf32>
    %23 = tpu.matmul %21, %22, %cst_13 {dimension_numbers = #tpu.dot_dimension_numbers<[1], [0], [0], [1], [0, 0, 1, 1], [], []>} : vector<3x1xf32>, vector<1x2xf32>, vector<3x2xf32> -> vector<3x2xf32>
    %c72 = arith.constant 72 : index
    %c0_14 = arith.constant 0 : index
    %24 = vector.load %arg1[%c72, %c0_14] : memref<280x128xf32, #tpu.memory_space<vmem>>, vector<1x2xf32>
    %25 = vector.broadcast %24 : vector<1x2xf32> to vector<3x2xf32>
    %26 = arith.addf %23, %25 : vector<3x2xf32>
    %27 = math.tanh %26 : vector<3x2xf32>
    %c80 = arith.constant 80 : index
    %c0_15 = arith.constant 0 : index
    %28 = vector.load %arg1[%c80, %c0_15] : memref<280x128xf32, #tpu.memory_space<vmem>>, vector<2x4xf32>
    %cst_16 = arith.constant dense<0.000000e+00> : vector<3x4xf32>
    %29 = tpu.matmul %27, %28, %cst_16 {dimension_numbers = #tpu.dot_dimension_numbers<[1], [0], [0], [1], [0, 0, 1, 1], [], []>} : vector<3x2xf32>, vector<2x4xf32>, vector<3x4xf32> -> vector<3x4xf32>
    %c88 = arith.constant 88 : index
    %c0_17 = arith.constant 0 : index
    %30 = vector.load %arg1[%c88, %c0_17] : memref<280x128xf32, #tpu.memory_space<vmem>>, vector<1x4xf32>
    %31 = vector.broadcast %30 : vector<1x4xf32> to vector<3x4xf32>
    %32 = arith.addf %29, %31 : vector<3x4xf32>
    %33 = math.tanh %32 : vector<3x4xf32>
    %c96 = arith.constant 96 : index
    %c0_18 = arith.constant 0 : index
    %34 = vector.load %arg1[%c96, %c0_18] : memref<280x128xf32, #tpu.memory_space<vmem>>, vector<4x64xf32>
    %cst_19 = arith.constant dense<0.000000e+00> : vector<3x64xf32>
    %35 = tpu.matmul %33, %34, %cst_19 {dimension_numbers = #tpu.dot_dimension_numbers<[1], [0], [0], [1], [0, 0, 1, 1], [], []>} : vector<3x4xf32>, vector<4x64xf32>, vector<3x64xf32> -> vector<3x64xf32>
    %c104 = arith.constant 104 : index
    %c0_20 = arith.constant 0 : index
    %36 = vector.load %arg1[%c104, %c0_20] : memref<280x128xf32, #tpu.memory_space<vmem>>, vector<1x64xf32>
    %37 = vector.broadcast %36 : vector<1x64xf32> to vector<3x64xf32>
    %38 = arith.addf %35, %37 : vector<3x64xf32>
    %39 = math.tanh %38 : vector<3x64xf32>
    %c112 = arith.constant 112 : index
    %c0_21 = arith.constant 0 : index
    %40 = vector.load %arg1[%c112, %c0_21] : memref<280x128xf32, #tpu.memory_space<vmem>>, vector<64x32xf32>
    %cst_22 = arith.constant dense<0.000000e+00> : vector<3x32xf32>
    %41 = tpu.matmul %39, %40, %cst_22 {dimension_numbers = #tpu.dot_dimension_numbers<[1], [0], [0], [1], [0, 0, 1, 1], [], []>} : vector<3x64xf32>, vector<64x32xf32>, vector<3x32xf32> -> vector<3x32xf32>
    %c176 = arith.constant 176 : index
    %c0_23 = arith.constant 0 : index
    %42 = vector.load %arg1[%c176, %c0_23] : memref<280x128xf32, #tpu.memory_space<vmem>>, vector<1x32xf32>
    %43 = vector.broadcast %42 : vector<1x32xf32> to vector<3x32xf32>
    %44 = arith.addf %41, %43 : vector<3x32xf32>
    %45 = math.tanh %44 : vector<3x32xf32>
    %c184 = arith.constant 184 : index
    %c0_24 = arith.constant 0 : index
    %46 = vector.load %arg1[%c184, %c0_24] : memref<280x128xf32, #tpu.memory_space<vmem>>, vector<32x16xf32>
    %cst_25 = arith.constant dense<0.000000e+00> : vector<3x16xf32>
    %47 = tpu.matmul %45, %46, %cst_25 {dimension_numbers = #tpu.dot_dimension_numbers<[1], [0], [0], [1], [0, 0, 1, 1], [], []>} : vector<3x32xf32>, vector<32x16xf32>, vector<3x16xf32> -> vector<3x16xf32>
    %c216 = arith.constant 216 : index
    %c0_26 = arith.constant 0 : index
    %48 = vector.load %arg1[%c216, %c0_26] : memref<280x128xf32, #tpu.memory_space<vmem>>, vector<1x16xf32>
    %49 = vector.broadcast %48 : vector<1x16xf32> to vector<3x16xf32>
    %50 = arith.addf %47, %49 : vector<3x16xf32>
    %51 = math.tanh %50 : vector<3x16xf32>
    %c224 = arith.constant 224 : index
    %c0_27 = arith.constant 0 : index
    %52 = vector.load %arg1[%c224, %c0_27] : memref<280x128xf32, #tpu.memory_space<vmem>>, vector<16x32xf32>
    %cst_28 = arith.constant dense<0.000000e+00> : vector<3x32xf32>
    %53 = tpu.matmul %51, %52, %cst_28 {dimension_numbers = #tpu.dot_dimension_numbers<[1], [0], [0], [1], [0, 0, 1, 1], [], []>} : vector<3x16xf32>, vector<16x32xf32>, vector<3x32xf32> -> vector<3x32xf32>
    %c272 = arith.constant 272 : index
    %c0_29 = arith.constant 0 : index
    %54 = vector.load %arg1[%c272, %c0_29] : memref<280x128xf32, #tpu.memory_space<vmem>>, vector<1x32xf32>
    %55 = vector.broadcast %54 : vector<1x32xf32> to vector<3x32xf32>
    %56 = arith.addf %53, %55 : vector<3x32xf32>
    %c240 = arith.constant 240 : index
    %c0_30 = arith.constant 0 : index
    %57 = vector.load %arg1[%c240, %c0_30] : memref<280x128xf32, #tpu.memory_space<vmem>>, vector<32x32xf32>
    %58 = vector.extract_strided_slice %56 {offsets = [0, 0], sizes = [1, 32], strides = [1, 1]} : vector<3x32xf32> to vector<1x32xf32>
    %59 = math.tanh %58 : vector<1x32xf32>
    %60 = vector.extract_strided_slice %56 {offsets = [1, 0], sizes = [1, 32], strides = [1, 1]} : vector<3x32xf32> to vector<1x32xf32>
    %cst_31 = arith.constant dense<0.000000e+00> : vector<1x32xf32>
    %61 = tpu.matmul %59, %57, %cst_31 {dimension_numbers = #tpu.dot_dimension_numbers<[1], [0], [0], [1], [0, 0, 1, 1], [], []>} : vector<1x32xf32>, vector<32x32xf32>, vector<1x32xf32> -> vector<1x32xf32>
    %62 = arith.addf %60, %61 : vector<1x32xf32>
    %63 = math.tanh %62 : vector<1x32xf32>
    %64 = vector.extract_strided_slice %56 {offsets = [2, 0], sizes = [1, 32], strides = [1, 1]} : vector<3x32xf32> to vector<1x32xf32>
    %cst_32 = arith.constant dense<0.000000e+00> : vector<1x32xf32>
    %65 = tpu.matmul %63, %57, %cst_32 {dimension_numbers = #tpu.dot_dimension_numbers<[1], [0], [0], [1], [0, 0, 1, 1], [], []>} : vector<1x32xf32>, vector<32x32xf32>, vector<1x32xf32> -> vector<1x32xf32>
    %66 = arith.addf %64, %65 : vector<1x32xf32>
    %67 = math.tanh %66 : vector<1x32xf32>
    %c0_33 = arith.constant 0 : index
    %c0_34 = arith.constant 0 : index
    %68 = vector.load %arg2[%c0_33, %c0_34] : memref<1x32xf32, #tpu.memory_space<vmem>>, vector<1x32xf32>
    tpu.vector_store %arg2[%c0_33, %c0_34], %67 {strides = array<i32>} : memref<1x32xf32, #tpu.memory_space<vmem>>, vector<1x32xf32>,
    return
  }
}

</mosaic_0001>

<bundles_post_ra>
// kernel: forward.1
= control target key start
LH: loop header
LB: loop body
LE: loop exit
PB: predicated region body
PF: predicated region fallthrough
CT: control target
= control target key end

     0   :  { %7 = vsyncpa [#allocation3], 0  ;;  %s1430_s0 = inlined_call_operand.vmem [shape: f32[3,12], index: 0, kind: input, shape index: {}]   ;;  %s1431_s1 = inlined_call_operand.hbm [shape: f32[280,128], index: 1, kind: input, shape index: {}]   ;;  %s1432_s2 = inlined_call_operand.hbm [shape: f32[1,32], index: 2, kind: output, shape index: {}]  }
   0x1   :  { %8 = vsyncpa [#allocation4], 0  ;;  %s1326_s9 = smov [#allocation2]   ;;  %s1278_s13 = scalar_lea.hbm %s1431_s1, 4480 }
   0x2   :  { %s16_s10 = sshll.u32 %s1326_s9, 4  ;;  %p1279_p0 = scmp.ne.s32.totalorder %s1431_s1, %s1278_s13  ;;  %s17_s10 = int_to_ptr.vmem [resolvable:$true] %s16_s10 }
   0x3   :  { %p1282_p1 = scmp.lt.u32.totalorder %s1278_s13, %s1431_s1 }
   0x5   :  { %p1284_p2 = pnand %p1282_p1, %p1279_p0 }
   0x7   :  { %1287 = shalt.err (!%p1284_p2)
}
   0x8   :  { %s1288_s18 = scalar_lea.vmem %s17_s10, 4480  ;;  %p1293_p4 = scmp.lt.s32.totalorder %s17_s10, %s17_s10 }
   0x9   :  { %p1289_p3 = scmp.ne.s32.totalorder %s17_s10, %s1288_s18  ;;  %p1294_p5 = scmp.lt.s32.totalorder %s1288_s18, %s1288_s18 }
   0xb   :  { %p1295_p6 = por %p1294_p5, %p1293_p4 }
   0xd   :  { %p1296_p7 = pnand %p1295_p6, %p1289_p3 }
   0xf   :  { %1299 = shalt.err (!%p1296_p7)
}
  0x10   :  { %s1327_s19 = smov 128   ;;  %s1328_s20 = smov 8  }
  0x11   :  { %22 = dma.hbm_to_vmem [thread:$0]  %s1431_s1, 4480, %s17_s10, [#allocation3], %s1327_s19, %s1327_s19, %s1328_s20  }
  0x12   :  { %1322 = dma.done.wait [#allocation3], 4480  }
  0x13   :  { %1323 = vsyncadd [#allocation3], 4294962816  ;;  %v1329_v0 = vmov 0.0|0.0   ;;  %vm1330_vm0 = vmmov 0   ;;  %v1331_v1 = vmov 0.0   ;;  %vm33_vm1 = vcmask 1043456  }
  0x14   :  { %1209 = vmatprep.subr.bf16.mxu0 %v1329_v0  ;;  %1117 = vmatprep.mubr.msk.f32.mxu0 %vm1330_vm0, %v1331_v1  ;;  %v27_v2 = vld [vmem:[#allocation2] sm:$0xff]  ;;  %v28_v3 = vld [vmem:[#allocation2 + $0x8] sm:$0xf]  ;;  %vm1332_vm2 = vmmov 1   ;;  %vm29_vm4 = vcmask 97280   ;;  %vm114_vm5 = vcmask 31744  }
  0x15   :  { %1120 = vmatprep.subr.mxu1 %v1331_v1  ;;  %1122 = vmatprep.mubr.msk.f32.mxu1 %vm1330_vm0, %v1331_v1  ;;  %vm1211_vm3 = vmpackc.low %vm33_vm1, %vm1332_vm2  ;;  %v1210_v4 = vpack.c.bf16 %v28_v3, %v27_v2  ;;  %v26_v5 = vld [vmem:[%s1430_s0] sm:$0x7]  ;;  %v108_v6 = vld [vmem:[#allocation2 + $0x10] sm:$0xf]  ;;  %vm202_vm6 = vcmask 1041408   ;;  %vm198_vm7 = vcmask 15360  }
  0x16   :  { %1121 = vmatpush3.msk.msra.mxu1 %vm33_vm1, %v108_v6  ;;  %v192_v10 = vld [vmem:[#allocation2 + $0x20] sm:$0x3]  ;;  %v1045_v11 = vld [vmem:[#allocation2 + $0x18] ss:$0 sm:$0xff]  ;;  %v277_v16 = vld [vmem:[#allocation2 + $0x30] sm:$0x1] }
  0x17   :  { %1212 = vmatpush3.bf16.msk.msra.mxu0 %vm1211_vm3, %v1210_v4  ;;  %1125 = vmatprep.subr.mxu1 %v1331_v1  ;;  %vm287_vm8 = vcmask 1040384   ;;  %v1048_v17 = vld [vmem:[#allocation2 + $0x28] ss:$0 sm:$0xff]  ;;  %vm283_vm9 = vcmask 7168   ;;  %v362_v22 = vld [vmem:[#allocation2 + $0x40] sm:$0x1] }
  0x18   :  { %1130 = vmatprep.subr.mxu0 %v1331_v1  ;;  %v1051_v23 = vld [vmem:[#allocation2 + $0x38] ss:$0 sm:$0xff]  ;;  %v445_v28 = vld [vmem:[#allocation2 + $0x50] sm:$0x3]  ;;  %v1054_v29 = vld [vmem:[#allocation2 + $0x48] ss:$0 sm:$0xff] }
  0x19   :  { %v528_v34 = vld [vmem:[#allocation2 + $0x60] sm:$0xf]  ;;  %v611_v35 = vld [vmem:[#allocation2 + $0x70] sm:$0xff]  ;;  %v612_v36 = vld [vmem:[#allocation2 + $0x78] sm:$0xff]  ;;  %vm624_vm10 = vcmask 523264   ;;  %vm708_vm11 = vcmask 261120  }
  0x1a   :  { %1118 = vmatmul.mubr.msk.f32.vlgmr.msra.gmra.mrb[0].mxu0 %vm29_vm4, %v26_v5  ;;  %v1214_v37 = vpack.c.bf16 %v612_v36, %v611_v35  ;;  %v1057_v38 = vld [vmem:[#allocation2 + $0x58] ss:$0 sm:$0xff]  ;;  %v613_v43 = vld [vmem:[#allocation2 + $0x80] sm:$0xff]  ;;  %v614_v44 = vld [vmem:[#allocation2 + $0x88] sm:$0xff]  ;;  %vm790_vm12 = vcmask 130048   ;;  %s1333_s0 = smov [#allocation5]  }
  0x1b   :  { %1132 = vmatprep.mubr.msk.f32.mxu0 %vm1330_vm0, %v1331_v1  ;;  %1131 = vmatpush3.msk.msra.mxu0 %vm287_vm8, %v277_v16  ;;  %v1217_v45 = vpack.c.bf16 %v614_v44, %v613_v43  ;;  %v615_v46 = vld [vmem:[#allocation2 + $0x90] sm:$0xff]  ;;  %v616_v47 = vld [vmem:[#allocation2 + $0x98] sm:$0xff]  ;;  %v617_v49 = vld [vmem:[#allocation2 + $0xa0] sm:$0xff]  ;;  %s1034_s24 = sshll.u32 %s1333_s0, 4  ;;  %vm1026_vm13 = vcmask 256002   ;;  %s1035_s24 = int_to_ptr.vmem [resolvable:$true] %s1034_s24 }
  0x1c   :  { %1140 = vmatprep.subr.mxu0 %v1331_v1  ;;  %v1220_v48 = vpack.c.bf16 %v616_v47, %v615_v46  ;;  %v618_v50 = vld [vmem:[#allocation2 + $0xa8] sm:$0xff]  ;;  %v699_v57 = vld [vmem:[#allocation2 + $0xb8] sm:$0xff]  ;;  %v700_v58 = vld [vmem:[#allocation2 + $0xc0] sm:$0xff]  ;;  %s1300_s25 = scalar_lea.vmem %s1035_s24, 16  ;;  %s1304_s26 = scalar_lea.vmem %s1035_s24, 32 }
  0x1d   :  { %v1223_v51 = vpack.c.bf16 %v618_v50, %v617_v49  ;;  %v1060_v52 = vld [vmem:[#allocation2 + $0x68] ss:$0 sm:$0xff]  ;;  %v1226_v60 = vpack.c.bf16 %v700_v58, %v699_v57  ;;  %v702_v61 = vld [vmem:[#allocation2 + $0xd0] sm:$0xff]  ;;  %v783_v6 = vld [vmem:[#allocation2 + $0xe0] sm:$0xff]  ;;  %p1301_p8 = scmp.ne.s32.totalorder %s1035_s24, %s1300_s25  ;;  %p1305_p9 = scmp.lt.s32.totalorder %s1035_s24, %s1035_s24 }
  0x1e   :  { %v701_v59 = vld [vmem:[#allocation2 + $0xc8] sm:$0xff]  ;;  %v1063_v63 = vld [vmem:[#allocation2 + $0xb0] ss:$0 sm:$0xff]  ;;  %v866_v16 = vld [vmem:[#allocation2 + $0x100] sm:$0xff]  ;;  %p1306_p10 = scmp.lt.s32.totalorder %s1304_s26, %s1300_s25 }
  0x1f   :  { %v1229_v62 = vpack.c.bf16 %v702_v61, %v701_v59 }
  0x20   :  { %p1307_p11 = por %p1306_p10, %p1305_p9 }
  0x22   :  { %p1308_p12 = pnand %p1307_p11, %p1301_p8 }
  0xed   :  { %v103_v7 = vpop.f32.mrb[0].mxu0 }
  0xee   :  { %1254 = vtanh.f32 %v103_v7  ;;  %v1119_v8 = vpop.f32.mrb[1].mxu0  ;;  %v784_v7 = vld [vmem:[#allocation2 + $0xe8] sm:$0xff] }
  0xef   :  { %v1232_v8 = vpack.c.bf16 %v784_v7, %v783_v6 }
  0xf8   :  { %v1255_v9 = vpop.eup %1254 }
  0xf9   :  { %1123 = vmatmul.mubr.msk.f32.vlgmr.msra.gmra.mrb[0].mxu1 %vm114_vm5, %v1255_v9  ;;  %v1065_v9 = vld [vmem:[#allocation2 + $0xd8] ss:$0 sm:$0xff] }
  0xfa   :  { %1127 = vmatprep.mubr.msk.f32.mxu1 %vm1330_vm0, %v1331_v1  ;;  %1126 = vmatpush3.msk.msra.mxu1 %vm202_vm6, %v192_v10 }
  0xfb   :  { %1135 = vmatprep.subr.mxu1 %v1331_v1 }
 0x1cc   :  { %v187_v12 = vpop.f32.mrb[0].mxu1 }
 0x1cd   :  { %v188_v13 = vadd.f32 %v1045_v11, %v187_v12  ;;  %v1124_v14 = vpop.f32.mrb[1].mxu1 }
 0x1ce   :  { %v864_v14 = vld [vmem:[#allocation2 + $0xf0] sm:$0xff] }
 0x1cf   :  { %1256 = vtanh.f32 %v188_v13 }
 0x1d9   :  { %v1257_v15 = vpop.eup %1256 }
 0x1da   :  { %1128 = vmatmul.mubr.msk.f32.vlgmr.msra.gmra.mrb[2].mxu1 %vm198_vm7, %v1257_v15  ;;  %v865_v15 = vld [vmem:[#allocation2 + $0xf8] sm:$0xff] }
 0x1db   :  { %1137 = vmatprep.mubr.msk.f32.mxu1 %vm1330_vm0, %v1331_v1  ;;  %1136 = vmatpush3.msk.msra.mxu1 %vm287_vm8, %v362_v22 }
 0x1dc   :  { %1145 = vmatprep.subr.mxu1 %v1331_v1 }
 0x2ad   :  { %v272_v18 = vpop.f32.mrb[2].mxu1 }
 0x2ae   :  { %v273_v19 = vadd.f32 %v1048_v17, %v272_v18  ;;  %v1129_v20 = vpop.f32.mrb[3].mxu1  ;;  %v1235_v17 = vpack.c.bf16 %v865_v15, %v864_v14  ;;  %v867_v18 = vld [vmem:[#allocation2 + $0x108] sm:$0xff] }
 0x2af   :  { %v1067_v20 = vld [vmem:[#allocation2 + $0x110] ss:$0 sm:$0xff] }
 0x2b0   :  { %1258 = vtanh.f32 %v273_v19  ;;  %v1238_v19 = vpack.c.bf16 %v867_v18, %v866_v16 }
 0x2ba   :  { %v1259_v21 = vpop.eup %1258 }
 0x2bb   :  { %1133 = vmatmul.mubr.msk.f32.vlgmr.msra.gmra.mrb[2].mxu0 %vm283_vm9, %v1259_v21 }
 0x2bc   :  { %1142 = vmatprep.mubr.msk.f32.mxu0 %vm1330_vm0, %v1331_v1  ;;  %1141 = vmatpush3.msk.msra.mxu0 %vm202_vm6, %v445_v28 }
 0x2bd   :  { %1213 = vmatprep.subr.bf16.mxu0 %v1329_v0 }
 0x38e   :  { %v357_v24 = vpop.f32.mrb[2].mxu0 }
 0x38f   :  { %v358_v25 = vadd.f32 %v1051_v23, %v357_v24  ;;  %v1134_v26 = vpop.f32.mrb[3].mxu0 }
 0x391   :  { %1260 = vtanh.f32 %v358_v25 }
 0x39b   :  { %v1261_v27 = vpop.eup %1260 }
 0x39c   :  { %1138 = vmatmul.mubr.msk.f32.vlgmr.msra.gmra.mrb[4].mxu1 %vm283_vm9, %v1261_v27 }
 0x39d   :  { %1147 = vmatprep.mubr.msk.f32.mxu1 %vm1330_vm0, %v1331_v1  ;;  %1146 = vmatpush3.msk.msra.mxu1 %vm33_vm1, %v528_v34 }
 0x39e   :  { %1225 = vmatprep.subr.bf16.mxu1 %v1329_v0 }
 0x46f   :  { %v440_v30 = vpop.f32.mrb[4].mxu1 }
 0x470   :  { %v441_v31 = vadd.f32 %v1054_v29, %v440_v30  ;;  %v1139_v32 = vpop.f32.mrb[5].mxu1 }
 0x472   :  { %1262 = vtanh.f32 %v441_v31 }
 0x47c   :  { %v1263_v33 = vpop.eup %1262 }
 0x47d   :  { %1143 = vmatmul.mubr.msk.f32.vlgmr.msra.gmra.mrb[4].mxu0 %vm198_vm7, %v1263_v33 }
 0x47e   :  { %1166 = vmatprep.mubr.msk.f32.mxu0 %vm1330_vm0, %v1331_v1  ;;  %1215 = vmatpush3.bf16.msra.mxu0 %v1214_v37 }
 0x47f   :  { %1216 = vmatprep.subr.bf16.mxu0 %v1329_v0 }
 0x482   :  { %1218 = vmatpush3.bf16.msra.mxu0 %v1217_v45 }
 0x483   :  { %1219 = vmatprep.subr.bf16.mxu0 %v1329_v0 }
 0x486   :  { %1221 = vmatpush3.bf16.msra.mxu0 %v1220_v48 }
 0x487   :  { %1222 = vmatprep.subr.bf16.mxu0 %v1329_v0 }
 0x48a   :  { %1224 = vmatpush3.bf16.msra.mxu0 %v1223_v51 }
 0x48b   :  { %1240 = vmatprep.subr.bf16.mxu0 %v1329_v0 }
 0x550   :  { %v523_v39 = vpop.f32.mrb[4].mxu0 }
 0x551   :  { %v524_v40 = vadd.f32 %v1057_v38, %v523_v39  ;;  %v1144_v41 = vpop.f32.mrb[5].mxu0 }
 0x553   :  { %1264 = vtanh.f32 %v524_v40 }
 0x55d   :  { %v1265_v42 = vpop.eup %1264 }
 0x55e   :  { %1148 = vmatmul.mubr.msk.f32.vlgmr.msra.gmra.mrb[6].mxu1 %vm114_vm5, %v1265_v42 }
 0x55f   :  { %1177 = vmatprep.mubr.msk.f32.mxu1 %vm1330_vm0, %v1331_v1  ;;  %1227 = vmatpush3.bf16.msra.mxu1 %v1226_v60 }
 0x560   :  { %1228 = vmatprep.subr.bf16.mxu1 %v1329_v0 }
 0x563   :  { %1230 = vmatpush3.bf16.msra.mxu1 %v1229_v62 }
 0x564   :  { %1231 = vmatprep.subr.bf16.mxu1 %v1329_v0 }
 0x631   :  { %v606_v53 = vpop.f32.mrb[6].mxu1 }
 0x632   :  { %v607_v54 = vadd.f32 %v1060_v52, %v606_v53  ;;  %v1149_v55 = vpop.f32.mrb[7].mxu1 }
 0x634   :  { %1266 = vtanh.f32 %v607_v54 }
 0x63e   :  { %v1267_v56 = vpop.eup %1266 }
 0x63f   :  { %1167 = vmatmul.mubr.msk.f32.vlgmr.msra.gmra.mrb[6].mxu0 %vm624_vm10, %v1267_v56 }
 0x640   :  { %1206 = vmatprep.mubr.msk.f32.mxu0 %vm1330_vm0, %v1331_v1  ;;  %1242 = vmatpush3.bf16.msra.mxu0 %v1235_v17 }
 0x641   :  { %1243 = vmatprep.subr.bf16.mxu0 %v1329_v0 }
 0x644   :  { %1245 = vmatpush3.bf16.msra.mxu0 %v1238_v19 }
 0x712   :  { %v694_v2 = vpop.f32.mrb[6].mxu0 }
 0x713   :  { %v695_v3 = vadd.f32 %v1063_v63, %v694_v2  ;;  %v1168_v4 = vpop.f32.mrb[7].mxu0 }
 0x715   :  { %1268 = vtanh.f32 %v695_v3 }
 0x71f   :  { %v1269_v5 = vpop.eup %1268 }
 0x720   :  { %1178 = vmatmul.mubr.msk.f32.vlgmr.msra.gmra.mrb[8].mxu1 %vm708_vm11, %v1269_v5 }
 0x721   :  { %1184 = vmatprep.mubr.msk.f32.mxu1 %vm1330_vm0, %v1331_v1  ;;  %1233 = vmatpush3.bf16.msra.mxu1 %v1232_v8 }
 0x722   :  { %1234 = vmatprep.subr.bf16.mxu1 %v1329_v0 }
 0x7f3   :  { %v778_v10 = vpop.f32.mrb[8].mxu1 }
 0x7f4   :  { %v779_v11 = vadd.f32 %v1065_v9, %v778_v10  ;;  %v1179_v12 = vpop.f32.mrb[9].mxu1 }
 0x7f6   :  { %1270 = vtanh.f32 %v779_v11 }
 0x800   :  { %v1271_v13 = vpop.eup %1270 }
 0x801   :  { %1185 = vmatmul.mubr.msk.f32.vlgmr.msra.gmra.mrb[10].mxu1 %vm790_vm12, %v1271_v13 }
 0x802   :  { %1195 = vmatprep.mubr.msk.f32.mxu1 %vm1330_vm0, %v1331_v1  ;;  %1236 = vmatpush3.bf16.msra.mxu1 %v1235_v17 }
 0x803   :  { %1237 = vmatprep.subr.bf16.mxu1 %v1329_v0 }
 0x806   :  { %1239 = vmatpush3.bf16.msra.mxu1 %v1238_v19 }
 0x8d4   :  { %v860_v21 = vpop.f32.mrb[10].mxu1 }
 0x8d5   :  { %v861_v22 = vadd.f32 %v1067_v20, %v860_v21  ;;  %v1186_v23 = vpop.f32.mrb[11].mxu1 }
 0x8d7   :  { %1272 = vtanh.f32 %v861_v22 }
 0x8e1   :  { %v1273_v1 = vpop.eup %1272 }
 0x8e2   :  { %1196 = vmatmul.mubr.msk.f32.vlgmr.msra.gmra.mrb[12].mxu1 %vm708_vm11, %v1273_v1 }
 0x9b5   :  { %v938_v24 = vpop.f32.mrb[12].mxu1 }
 0x9b6   :  { %v943_v25 = vrot.slane %v938_v24, 7  ;;  %v1197_v26 = vpop.f32.mrb[13].mxu1 }
 0x9b8   :  { %v945_v27 = vadd.f32 %v943_v25, %v861_v22 }
 0x9ba   :  { %1274 = vtanh.f32 %v945_v27 }
 0x9c4   :  { %v1275_v28 = vpop.eup %1274 }
 0x9c5   :  { %v948_v29 = vrot.slane %v1275_v28, 1 }
 0x9c7   :  { %1207 = vmatmul.mubr.msk.f32.vlgmr.msra.gmra.mrb[8].mxu0 %vm708_vm11, %v948_v29 }
 0xa9a   :  { %v1017_v0 = vpop.f32.mrb[8].mxu0 }
 0xa9b   :  { %v1022_v30 = vrot.slane %v1017_v0, 6  ;;  %v1208_v31 = vpop.f32.mrb[9].mxu0 }
 0xa9d   :  { %v1024_v32 = vadd.f32 %v1022_v30, %v861_v22 }
 0xa9f   :  { %1276 = vtanh.f32 %v1024_v32 }
 0xaa9   :  { %v1277_v33 = vpop.eup %1276 }
 0xaaa   :  { %1027 = vst.msk [vmem:[#allocation5 - $0x2] sm:$0x4] %vm1026_vm13, %v1277_v33 }
 0xaab   :  { %1311 = shalt.err (!%p1308_p12)
}
 0xaac   :  { %s1312_s29 = scalar_lea.hbm %s1432_s2, 16 }
 0xaad   :  { %p1313_p13 = scmp.ne.s32.totalorder %s1432_s2, %s1312_s29  ;;  %p1316_p0 = scmp.lt.u32.totalorder %s1312_s29, %s1432_s2 }
 0xaaf   :  { %p1318_p1 = pnand %p1316_p0, %p1313_p13 }
 0xab1   :  { %1321 = shalt.err (!%p1318_p1)
}
 0xab2   :  { %1037 = dma.vmem_to_hbm [thread:$0]  %s1035_s24, 16, %s1432_s2, [#allocation4]  }
 0xab3   :  { %1324 = dma.done.wait [#allocation4], 16  }
 0xab4   :  { %1325 = vsyncadd [#allocation4], 4294967280 }
 0xab5   :  { %1041 = vsyncpa [#allocation3], 1 }
 0xab6   :  { %1042 = vsyncpa [#allocation4], 1 }

</bundles_post_ra>
